<compile_context>
chip_gen: v5e
topology: v5e:2x2
jax: 0.10.0
libtpu: 0.0.40
codegen_flags: <defaults>
</compile_context>

<pallas_src>
import jax
import jax.numpy as jnp
from jax.experimental import pallas as pl
from jax.experimental.pallas import tpu as pltpu


# ---------------------------------------------------------------------------
# Fused kernel: hidden1 + relu + hidden2 + residual add + relu, one batch tile.
# Weights are stored [in_features, out_features] (PyTorch W transposed) so the
# kernel computes x @ W + b directly on the MXU.
# ---------------------------------------------------------------------------
def _basic_block_kernel(x_ref, w1_ref, b1_ref, w2_ref, b2_ref, o_ref):
    x = x_ref[...]                                   # (tile_b, n_input) f32

    # hidden1 + relu: bf16 operands on the MXU, f32 accumulation.
    h = jnp.dot(x.astype(jnp.bfloat16), w1_ref[...],
                preferred_element_type=jnp.float32) + b1_ref[...]
    h = jnp.maximum(h, 0.0)

    # hidden2 (no activation before the residual add).
    t = jnp.dot(h.astype(jnp.bfloat16), w2_ref[...],
                preferred_element_type=jnp.float32) + b2_ref[...]

    # residual add + relu in f32 on the VPU; lane-dense store.
    o_ref[...] = jnp.maximum(x + t, 0.0).astype(o_ref.dtype)


def basic_block_forward(x, params, *, tile_b=256):
    """Fused BasicBlock forward.

    x: [B, n_input] float32
    params: w1 [n_input, n_hidden] bf16, b1 [1, n_hidden] f32,
            w2 [n_hidden, n_input] bf16, b2 [1, n_input] f32
    """
    B, n_in = x.shape
    n_hidden = params["w1"].shape[1]
    assert params["w1"].shape == (n_in, n_hidden)
    assert params["w2"].shape == (n_hidden, n_in)

    # Pad the batch to a multiple of tile_b: keeps the MXU M-dim full and lets
    # the parallel grid split evenly across both TensorCores on v7x.
    pad_b = pl.cdiv(B, tile_b) * tile_b
    xp = x if pad_b == B else jnp.pad(x, ((0, pad_b - B), (0, 0)))

    grid = (pad_b // tile_b,)

    # Advisory cost estimate for XLA scheduling.
    flops = 4 * pad_b * n_in * n_hidden                      # two GEMMs
    bytes_accessed = (pad_b * n_in * 4 * 2                   # x in + out (f32)
                      + 2 * n_in * n_hidden * 2              # weights (bf16)
                      + (n_in + n_hidden) * 4)               # biases (f32)

    out = pl.pallas_call(
        _basic_block_kernel,
        out_shape=jax.ShapeDtypeStruct((pad_b, n_in), x.dtype),
        grid=grid,
        in_specs=[
            pl.BlockSpec((tile_b, n_in), lambda i: (i, 0)),     # x (batch-tiled)
            pl.BlockSpec((n_in, n_hidden), lambda i: (0, 0)),   # w1 (resident)
            pl.BlockSpec((1, n_hidden), lambda i: (0, 0)),      # b1
            pl.BlockSpec((n_hidden, n_in), lambda i: (0, 0)),   # w2 (resident)
            pl.BlockSpec((1, n_in), lambda i: (0, 0)),          # b2
        ],
        out_specs=pl.BlockSpec((tile_b, n_in), lambda i: (i, 0)),
        compiler_params=pltpu.CompilerParams(
            dimension_semantics=("parallel",),
            vmem_limit_bytes=32 * 1024 * 1024),
        cost_estimate=pl.CostEstimate(flops=flops, transcendentals=0,
                                      bytes_accessed=bytes_accessed),
    )(xp, params["w1"], params["b1"], params["w2"], params["b2"])

    return out[:B] if pad_b != B else out


# ---------------------------------------------------------------------------
# Deterministic parameter construction (PyTorch Linear default init:
# uniform(-1/sqrt(fan_in), 1/sqrt(fan_in)) for weight and bias).
# Weights stored [in, out] and cast to bf16 for the MXU; biases kept f32.
# ---------------------------------------------------------------------------
def init_params(key, n_input, n_hidden):
    def lin(k, fan_in, fan_out):
        k_w, k_b = jax.random.split(k)
        bound = 1.0 / jnp.sqrt(jnp.float32(fan_in))
        w = jax.random.uniform(k_w, (fan_in, fan_out), jnp.float32, -bound, bound)
        b = jax.random.uniform(k_b, (1, fan_out), jnp.float32, -bound, bound)
        return w, b

    k1, k2 = jax.random.split(key)
    w1, b1 = lin(k1, n_input, n_hidden)
    w2, b2 = lin(k2, n_hidden, n_input)
    return dict(w1=w1.astype(jnp.bfloat16), b1=b1,
                w2=w2.astype(jnp.bfloat16), b2=b2)


# ---------------------------------------------------------------------------
# Pure-JAX references.
# ---------------------------------------------------------------------------
def basic_block_reference_f32(x, params):
    """Mirrors the PyTorch forward in full f32 (weights upcast)."""
    w1 = params["w1"].astype(jnp.float32)
    w2 = params["w2"].astype(jnp.float32)
    h = jnp.maximum(x @ w1 + params["b1"], 0.0)
    t = h @ w2 + params["b2"]
    return jnp.maximum(x + t, 0.0)


def basic_block_reference_bf16(x, params):
    """Same math as the kernel (bf16 matmul operands, f32 accumulation)."""
    h = jnp.dot(x.astype(jnp.bfloat16), params["w1"],
                preferred_element_type=jnp.float32) + params["b1"]
    h = jnp.maximum(h, 0.0)
    t = jnp.dot(h.astype(jnp.bfloat16), params["w2"],
                preferred_element_type=jnp.float32) + params["b2"]
    return jnp.maximum(x + t, 0.0)


if __name__ == "__main__":
    # BasicBlock operates at the network's hidden width in DeePFGM, so use a
    # lane-dense feature size (128) and a batch that fills two 256-row tiles.
    B, N_INPUT, N_HIDDEN = 512, 128, 128

    key = jax.random.PRNGKey(0)
    k_x, k_p = jax.random.split(key)
    x = jax.random.normal(k_x, (B, N_INPUT), jnp.float32)
    params = init_params(k_p, N_INPUT, N_HIDDEN)

    out = basic_block_forward(x, params, tile_b=256)
    out = jax.block_until_ready(out)
    assert out.shape == (B, N_INPUT)

    # Tight check against a reference that uses identical bf16 matmul math.
    ref_bf16 = basic_block_reference_bf16(x, params)
    assert jnp.allclose(out, ref_bf16, atol=1e-3, rtol=1e-3), \
        "mismatch vs bf16-matched reference"

    # Looser sanity check against the full-f32 (PyTorch-equivalent) reference;
    # tolerance accounts for the bf16 matmul operands.
    ref_f32 = basic_block_reference_f32(x, params)
    assert jnp.allclose(out, ref_f32, atol=5e-2, rtol=5e-2), \
        "mismatch vs f32 reference"

    print("KERNEL_OK")
</pallas_src>

<mosaic_0001>
module attributes {stable_mosaic.version = 11 : i64} {
  func.func @_basic_block_kernel(%arg0: i32, %arg1: memref<256x128xf32, #tpu.memory_space<vmem>>, %arg2: memref<128x128xbf16, #tpu.memory_space<vmem>>, %arg3: memref<1x128xf32, #tpu.memory_space<vmem>>, %arg4: memref<128x128xbf16, #tpu.memory_space<vmem>>, %arg5: memref<1x128xf32, #tpu.memory_space<vmem>>, %arg6: memref<256x128xf32, #tpu.memory_space<vmem>>) attributes {dimension_semantics = [#tpu.dimension_semantics<parallel>], iteration_bounds = array<i64: 2>, scalar_prefetch = 0 : i64, scratch_operands = 0 : i64, tpu.core_type = #tpu.core_type<tc>, window_params = [{transform_indices = @transform_0, window_bounds = array<i64: 256, 128>}, {pipeline_mode = #tpu.pipeline_mode<synchronous>, transform_indices = @transform_1, window_bounds = array<i64: 128, 128>}, {pipeline_mode = #tpu.pipeline_mode<synchronous>, transform_indices = @transform_2, window_bounds = array<i64: 1, 128>}, {pipeline_mode = #tpu.pipeline_mode<synchronous>, transform_indices = @transform_3, window_bounds = array<i64: 128, 128>}, {pipeline_mode = #tpu.pipeline_mode<synchronous>, transform_indices = @transform_4, window_bounds = array<i64: 1, 128>}, {transform_indices = @transform_5, window_bounds = array<i64: 256, 128>}]} {
    %c0 = arith.constant 0 : index
    %c0_0 = arith.constant 0 : index
    %0 = vector.load %arg1[%c0, %c0_0] : memref<256x128xf32, #tpu.memory_space<vmem>>, vector<256x128xf32>
    %1 = arith.truncf %0 : vector<256x128xf32> to vector<256x128xbf16>
    %c0_1 = arith.constant 0 : index
    %c0_2 = arith.constant 0 : index
    %2 = vector.load %arg2[%c0_1, %c0_2] : memref<128x128xbf16, #tpu.memory_space<vmem>>, vector<128x128xbf16>
    %cst = arith.constant dense<0.000000e+00> : vector<256x128xf32>
    %3 = tpu.matmul %1, %2, %cst {dimension_numbers = #tpu.dot_dimension_numbers<[1], [0], [0], [1], [0, 0, 1, 1], [], []>} : vector<256x128xbf16>, vector<128x128xbf16>, vector<256x128xf32> -> vector<256x128xf32>
    %c0_3 = arith.constant 0 : index
    %c0_4 = arith.constant 0 : index
    %4 = vector.load %arg3[%c0_3, %c0_4] : memref<1x128xf32, #tpu.memory_space<vmem>>, vector<1x128xf32>
    %5 = vector.broadcast %4 : vector<1x128xf32> to vector<256x128xf32>
    %6 = arith.addf %3, %5 : vector<256x128xf32>
    %cst_5 = arith.constant 0.000000e+00 : f32
    %7 = vector.broadcast %cst_5 : f32 to vector<256x128xf32>
    %8 = arith.maximumf %6, %7 : vector<256x128xf32>
    %9 = arith.truncf %8 : vector<256x128xf32> to vector<256x128xbf16>
    %c0_6 = arith.constant 0 : index
    %c0_7 = arith.constant 0 : index
    %10 = vector.load %arg4[%c0_6, %c0_7] : memref<128x128xbf16, #tpu.memory_space<vmem>>, vector<128x128xbf16>
    %cst_8 = arith.constant dense<0.000000e+00> : vector<256x128xf32>
    %11 = tpu.matmul %9, %10, %cst_8 {dimension_numbers = #tpu.dot_dimension_numbers<[1], [0], [0], [1], [0, 0, 1, 1], [], []>} : vector<256x128xbf16>, vector<128x128xbf16>, vector<256x128xf32> -> vector<256x128xf32>
    %c0_9 = arith.constant 0 : index
    %c0_10 = arith.constant 0 : index
    %12 = vector.load %arg5[%c0_9, %c0_10] : memref<1x128xf32, #tpu.memory_space<vmem>>, vector<1x128xf32>
    %13 = vector.broadcast %12 : vector<1x128xf32> to vector<256x128xf32>
    %14 = arith.addf %11, %13 : vector<256x128xf32>
    %15 = arith.addf %0, %14 : vector<256x128xf32>
    %cst_11 = arith.constant 0.000000e+00 : f32
    %16 = vector.broadcast %cst_11 : f32 to vector<256x128xf32>
    %17 = arith.maximumf %15, %16 : vector<256x128xf32>
    %c0_12 = arith.constant 0 : index
    %c0_13 = arith.constant 0 : index
    %18 = vector.load %arg6[%c0_12, %c0_13] : memref<256x128xf32, #tpu.memory_space<vmem>>, vector<256x128xf32>
    tpu.vector_store %arg6[%c0_12, %c0_13], %17 {strides = array<i32>} : memref<256x128xf32, #tpu.memory_space<vmem>>, vector<256x128xf32>,
    return
  }
  func.func @transform_0(%arg0: i32) -> (i32, i32) {
    %c0_i32 = arith.constant 0 : i32
    %c0_i32_0 = arith.constant 0 : i32
    return %arg0, %c0_i32 : i32, i32
  }
  func.func @transform_1(%arg0: i32) -> (i32, i32) {
    %c0_i32 = arith.constant 0 : i32
    %c0_i32_0 = arith.constant 0 : i32
    %c0_i32_1 = arith.constant 0 : i32
    return %c0_i32, %c0_i32_0 : i32, i32
  }
  func.func @transform_2(%arg0: i32) -> (i32, i32) {
    %c0_i32 = arith.constant 0 : i32
    %c0_i32_0 = arith.constant 0 : i32
    %c0_i32_1 = arith.constant 0 : i32
    return %c0_i32, %c0_i32_0 : i32, i32
  }
  func.func @transform_3(%arg0: i32) -> (i32, i32) {
    %c0_i32 = arith.constant 0 : i32
    %c0_i32_0 = arith.constant 0 : i32
    %c0_i32_1 = arith.constant 0 : i32
    return %c0_i32, %c0_i32_0 : i32, i32
  }
  func.func @transform_4(%arg0: i32) -> (i32, i32) {
    %c0_i32 = arith.constant 0 : i32
    %c0_i32_0 = arith.constant 0 : i32
    %c0_i32_1 = arith.constant 0 : i32
    return %c0_i32, %c0_i32_0 : i32, i32
  }
  func.func @transform_5(%arg0: i32) -> (i32, i32) {
    %c0_i32 = arith.constant 0 : i32
    %c0_i32_0 = arith.constant 0 : i32
    return %arg0, %c0_i32 : i32, i32
  }
}

</mosaic_0001>

<bundles_post_ra>
// kernel: tpu_custom_call.1
= control target key start
LH: loop header
LB: loop body
LE: loop exit
PB: predicated region body
PF: predicated region fallthrough
CT: control target
= control target key end

     0   :  { %10 = vsyncpa [#allocation3], 0  ;;  %s1701_s0 = inlined_call_operand.hbm [shape: f32[512,128], index: 0, kind: input, shape index: {}]   ;;  %s1702_s1 = inlined_call_operand.hbm [shape: bf16[128,128], index: 1, kind: input, shape index: {}]   ;;  %s1703_s2 = inlined_call_operand.vmem [shape: f32[1,128], index: 2, kind: input, shape index: {}]   ;;  %s1704_s3 = inlined_call_operand.hbm [shape: bf16[128,128], index: 3, kind: input, shape index: {}]   ;;  %s1705_s4 = inlined_call_operand.vmem [shape: f32[1,128], index: 4, kind: input, shape index: {}]   ;;  %s1706_s5 = inlined_call_operand.hbm [shape: f32[512,128], index: 5, kind: output, shape index: {}]  }
   0x1   :  { %12 = vsyncpa [#allocation3 + $0x1], 0 }
   0x2   :  { %13 = vsyncpa [#allocation6], 0 }
   0x3   :  { %14 = vsyncpa [#allocation4], 0 }
   0x4   :  { %16 = vsyncpa [#allocation4 + $0x1], 0  ;;  %s1285_s18 = smov 0   ;;  %s1287_s19 = smov 0  }
   0x5   :  { %s1289_s20 = smov 0   ;;  %s1291_s21 = smov 0  }
   0x6 LB: > { %s1306_s22 = sadd.s32 4294967295, %s1245_s21   ;;  %s894_s23 = sadd.s32 4294967294, %s1245_s21   ;;  %s1245_s21 = sphi %s1291_s21, %s1716_s21   ;;  %s1241_s20 = sphi %s1289_s20, %s1715_s20   ;;  %s1237_s19 = sphi %s1287_s19, %s1714_s19   ;;  %s1233_s18 = sphi %s1285_s18, %s1713_s18  }
   0x7   : > { %p42_p0 = scmp.ne.s32.totalorder %s1237_s19, %s1233_s18  ;;  %p43_p1 = scmp.eq.s32.totalorder %s1306_s22, 0 }
   0x8   : > { %p150_p2 = scmp.eq.s32.totalorder %s1306_s22, 1  ;;  %p156_p3 = scmp.eq.s32.totalorder %s894_s23, 1 }
   0x9   : > { %p1315_p4 = por %p43_p1, %p42_p0  ;;  %p895_p5 = scmp.ge.s32.totalorder %s1245_s21, 1 }
   0xa   : > { %p1320_p6 = por %p156_p3, %p42_p0  ;;  %p163_p7 = scmp.lt.s32.totalorder %s1245_s21, 3 }
   0xb   : > { %s174_s28 = sshll.u32 %s1702_s1, 4  ;;  %s1247_s30 = smov [#allocation5]   ;;  %s175_s28 = int_to_ptr.hbm [resolvable:$true] %s174_s28 }
   0xc   : > { %p1328_p8 = pnand %p895_p5, %p163_p7  ;;  %s176_s6 = sshll.u32 %s1247_s30, 4  ;;  %s177_s6 = int_to_ptr.vmem [resolvable:$true] %s176_s6 }
   0xd   : > { %s191_s9 = sshll.u32 %s1704_s3, 4  ;;  %s1248_s10 = smov 64   ;;  %s192_s9 = int_to_ptr.hbm [resolvable:$true] %s191_s9 }
   0xe   : > { %p1022_p9 = pneg %p1328_p8  ;;  %s1249_s11 = smov 4  }
   0xf   : > { %s1250_s12 = smov [#allocation7]   ;;  %s1341_s14 = sadd.s32 1, %s1245_s21  }
  0x10   : > { %p1023_p10 = pnand %p1022_p9, %p43_p1  ;;  %s193_s13 = sshll.u32 %s1250_s12, 4  ;;  %s194_s13 = int_to_ptr.vmem [resolvable:$true] %s193_s13 }
  0x11   : > { %s29_s15 = sadd.s32 1, %s1241_s20  ;;  %s26_s16 = ssub.s32 %s1245_s21, %s1341_s14 }
  0x12   : > { %1025 = dma.hbm_to_vmem [thread:$0]  (!%p1023_p10), %s175_s28, 1024, %s177_s6, [#allocation6], %s1248_s10, %s1248_s10, %s1249_s11  }
  0x13   : > { %1028 = dma.hbm_to_vmem [thread:$0]  (!%p1023_p10), %s192_s9, 1024, %s194_s13, [#allocation6], %s1248_s10, %s1248_s10, %s1249_s11  }
  0x14   : > { %p36_p12 = scmp.ne.s32.totalorder %s1241_s20, %s1237_s19  ;;  %p27_p13 = scmp.eq.s32.totalorder %s26_s16, 0 }
  0x15   : > { %p37_p0 = scmp.eq.s32.totalorder %s1245_s21, 0  ;;  %p1039_p5 = scmp.lt.s32.totalorder %s1245_s21, 2 }
  0x16   : > { %p1351_p3 = por %p150_p2, %p36_p12  ;;  %s210_s26 = sand.u32 1, %s1241_s20  }
  0x17   : > { %s1357_s23 = scalar_select %p27_p13, %s1241_s20, %s29_s15  }
  0x18   : > { %p38_p7 = por %p37_p0, %p36_p12  ;;  %s899_s27 = sshll.u32 %s210_s26, 8 }
  0x19   : > { %s976_s28 = sshll.u32 %s1245_s21, 8  ;;  %s214_s8 = scalar_lea.vmem [#allocation2], %s899_s27 }
  0x1a   : > { %s219_s7 = scalar_lea.hbm %s1701_s0, %s976_s28  ;;  %s222_s9 = sshll.u32 %s214_s8, 4  ;;  %s223_s9 = int_to_ptr.vmem [resolvable:$true] %s222_s9 }
  0x1b   : > { %s220_s10 = sshll.u32 %s219_s7, 4  ;;  %p1364_p2 = pnand %p1039_p5, %p38_p7  ;;  %s221_s10 = int_to_ptr.hbm [resolvable:$true] %s220_s10 }
  0x1c   : > { %s211_s12 = scalar_lea.sflag [#allocation3], %s210_s26  ;;  %s1145_s13 = sshra.s32 %s221_s10, 4  ;;  %s1146_s13 = int_to_ptr.hbm [resolvable:$true] %s1145_s13 }
  0x1d   : > { %s1147_s15 = scalar_lea.hbm %s1146_s13, 256  ;;  %p1149_p10 = pneg %p1364_p2 }
  0x1e   : > { %p1148_p9 = scmp.ne.s32.totalorder %s1146_s13, %s1147_s15  ;;  %s1152_s28 = scalar_lea.hbm %s1701_s0, 512 }
  0x1f   : > { %p1153_p0 = scmp.lt.s32.totalorder %s1146_s13, %s1701_s0  ;;  %p1154_p5 = scmp.lt.s32.totalorder %s1152_s28, %s1147_s15 }
  0x20   : > { %p1150_p12 = pnand %p1149_p10, %p1148_p9 }
  0x21   : > { %p1155_p7 = por %p1154_p5, %p1153_p0 }
  0x22   : > { %p1151_p13 = pneg %p1150_p12 }
  0x24   : > { %p1156_p11 = pnand %p1155_p7, %p1151_p13 }
  0x26   : > { %1159 = shalt.err (!%p1156_p11)
}
  0x27   : > { %s1251_s26 = smov 128   ;;  %s1252_s7 = smov 8  }
  0x28   : > { %1032 = dma.hbm_to_vmem [thread:$0]  (!%p1364_p2), %s221_s10, 4096, %s223_s9, %s211_s12, %s1251_s26, %s1251_s26, %s1252_s7  }
  0x29   : > { %234 = sbr.rel (%p1328_p8) target bundleno = 489 (0x1e9), region = 40  ;;  %s1381_s8 = sand.u32 (!%p1328_p8), 1, %s1237_s19  }
  0x2a   : > { %s903_s13 = sshll.u32 (!%p1328_p8), %s1381_s8, 8  ;;  %s237_s15 = scalar_lea.sflag (!%p1328_p8), [#allocation3], %s1381_s8 }
  0x2b   : > { %s1387_s16 = scalar_lea.vmem (!%p1328_p8), [#allocation2], %s903_s13 }
  0x2e   : > { %1220 = dma.done.wait (%p1315_p4), %s237_s15, 4096  }
  0x2f   : > { %1222 = vsyncadd (%p1315_p4), %s237_s15, 4294963200 }
  0x30   : > { %1224 = dma.done.wait (%p43_p1), [#allocation6], 2048  }
  0x31   : > { %1226 = vsyncadd (%p43_p1), [#allocation6], 4294965248  ;;  %v984_v0 = vld [vmem:[#allocation5 + $0x38] sm:$0xff]  ;;  %v983_v1 = vld [vmem:[#allocation5 + $0x30] sm:$0xff]  ;;  %s1571_s11 = scalar_lea.vmem [#allocation8], %s903_s13  ;;  %s993_s12 = sshll.u32 %s1306_s22, 8 }
  0x32   : > { %396 = vmatpush.bf16.msra.mxu0 %v984_v0  ;;  %994 = vmatpush.bf16.msra.mxu2 %v984_v0  ;;  %v982_v2 = vld [vmem:[#allocation5 + $0x28] sm:$0xff]  ;;  %v981_v3 = vld [vmem:[#allocation5 + $0x20] sm:$0xff]  ;;  %v980_v4 = vld [vmem:[#allocation5 + $0x18] sm:$0xff]  ;;  %s798_s30 = scalar_lea.hbm %s1706_s5, %s993_s12  ;;  %s799_s6 = sshll.u32 %s1571_s11, 4  ;;  %s800_s6 = int_to_ptr.vmem [resolvable:$true] %s799_s6 }
  0x33   : > { %v979_v5 = vld [vmem:[#allocation5 + $0x10] sm:$0xff]  ;;  %v978_v6 = vld [vmem:[#allocation5 + $0x8] sm:$0xff]  ;;  %v977_v7 = vld [vmem:[#allocation5] sm:$0xff]  ;;  %s801_s26 = sshll.u32 %s798_s30, 4  ;;  %s787_s7 = scalar_lea.sflag [#allocation4], %s1381_s8  ;;  %s802_s26 = int_to_ptr.hbm [resolvable:$true] %s801_s26 }
  0x34   : > { %v1398_v8 = vld [vmem:[%s1387_s16] sm:$0xff]  ;;  %v1401_v9 = vld [vmem:[%s1387_s16 + $0x8] sm:$0xff]  ;;  %v1414_v14 = vld [vmem:[%s1387_s16 + $0x10] sm:$0xff]  ;;  %s1189_s22 = sshra.s32 %s802_s26, 4  ;;  %s1195_s24 = scalar_lea.hbm %s1706_s5, 512  ;;  %s1190_s22 = int_to_ptr.hbm [resolvable:$true] %s1189_s22 }
  0x35   : > { %v1404_v10 = vld [vmem:[%s1387_s16 + $0x80] sm:$0xff]  ;;  %v1407_v11 = vld [vmem:[%s1387_s16 + $0x88] sm:$0xff]  ;;  %v312_v12 = vpack.c.bf16 %v1401_v9, %v1398_v8  ;;  %v1417_v15 = vld [vmem:[%s1387_s16 + $0x18] sm:$0xff]  ;;  %s1191_s13 = scalar_lea.hbm %s1190_s22, 256  ;;  %p1196_p11 = scmp.lt.s32.totalorder %s1190_s22, %s1706_s5 }
  0x36   : > { %397 = vmatpush.bf16.msra.mxu0 %v983_v1  ;;  %995 = vmatpush.bf16.msra.mxu2 %v983_v1  ;;  %v320_v13 = vpack.c.bf16 %v1407_v11, %v1404_v10  ;;  %v1420_v16 = vld [vmem:[%s1387_s16 + $0x90] sm:$0xff]  ;;  %v1423_v17 = vld [vmem:[%s1387_s16 + $0x98] sm:$0xff]  ;;  %v313_v18 = vpack.c.bf16 %v1417_v15, %v1414_v14  ;;  %v1430_v20 = vld [vmem:[%s1387_s16 + $0x20] sm:$0xff]  ;;  %p1192_p1 = scmp.ne.s32.totalorder %s1190_s22, %s1191_s13  ;;  %p1197_p2 = scmp.lt.s32.totalorder %s1195_s24, %s1191_s13 }
  0x37   : > { %v321_v19 = vpack.c.bf16 %v1423_v17, %v1420_v16  ;;  %v1433_v21 = vld [vmem:[%s1387_s16 + $0x28] sm:$0xff]  ;;  %v1436_v22 = vld [vmem:[%s1387_s16 + $0xa0] sm:$0xff]  ;;  %v1446_v26 = vld [vmem:[%s1387_s16 + $0x30] sm:$0xff] }
  0x38   : > { %v1439_v23 = vld [vmem:[%s1387_s16 + $0xa8] sm:$0xff]  ;;  %v314_v24 = vpack.c.bf16 %v1433_v21, %v1430_v20  ;;  %v1449_v27 = vld [vmem:[%s1387_s16 + $0x38] sm:$0xff]  ;;  %v1452_v28 = vld [vmem:[%s1387_s16 + $0xb0] sm:$0xff]  ;;  %p1193_p4 = pnand %p1192_p1, %p1351_p3  ;;  %p1198_p9 = por %p1197_p2, %p1196_p11 }
  0x39   : > { %v322_v25 = vpack.c.bf16 %v1439_v23, %v1436_v22  ;;  %v1455_v29 = vld [vmem:[%s1387_s16 + $0xb8] sm:$0xff]  ;;  %v315_v30 = vpack.c.bf16 %v1449_v27, %v1446_v26  ;;  %v1462_v32 = vld [vmem:[%s1387_s16 + $0x40] sm:$0xff]  ;;  %v1465_v33 = vld [vmem:[%s1387_s16 + $0x48] sm:$0xff] }
  0x3a   : > { %398 = vmatpush.bf16.msra.mxu0 %v982_v2  ;;  %996 = vmatpush.bf16.msra.mxu2 %v982_v2  ;;  %v323_v31 = vpack.c.bf16 %v1455_v29, %v1452_v28  ;;  %v1468_v34 = vld [vmem:[%s1387_s16 + $0xc0] sm:$0xff]  ;;  %v1471_v35 = vld [vmem:[%s1387_s16 + $0xc8] sm:$0xff]  ;;  %v316_v36 = vpack.c.bf16 %v1465_v33, %v1462_v32  ;;  %v992_v38 = vld [vmem:[#allocation7 + $0x38] sm:$0xff]  ;;  %p1194_p8 = pneg %p1193_p4 }
  0x3b   : > { %v324_v37 = vpack.c.bf16 %v1471_v35, %v1468_v34  ;;  %601 = vmatpush.bf16.msra.mxu1 %v992_v38  ;;  %1002 = vmatpush.bf16.msra.mxu3 %v992_v38  ;;  %v1478_v39 = vld [vmem:[%s1387_s16 + $0x50] sm:$0xff]  ;;  %v1481_v40 = vld [vmem:[%s1387_s16 + $0x58] sm:$0xff]  ;;  %v990_v46 = vld [vmem:[#allocation7 + $0x28] sm:$0xff] }
  0x3c   : > { %v1484_v41 = vld [vmem:[%s1387_s16 + $0xd0] sm:$0xff]  ;;  %v1487_v42 = vld [vmem:[%s1387_s16 + $0xd8] sm:$0xff]  ;;  %v317_v43 = vpack.c.bf16 %v1481_v40, %v1478_v39  ;;  %v989_v47 = vld [vmem:[#allocation7 + $0x20] sm:$0xff]  ;;  %p1199_p10 = pnand %p1198_p9, %p1194_p8 }
  0x3d   : > { %v325_v44 = vpack.c.bf16 %v1487_v42, %v1484_v41  ;;  %v991_v45 = vld [vmem:[#allocation7 + $0x30] sm:$0xff]  ;;  %v1494_v48 = vld [vmem:[%s1387_s16 + $0x60] sm:$0xff]  ;;  %v1497_v49 = vld [vmem:[%s1387_s16 + $0x68] sm:$0xff] }
  0x3e   : > { %399 = vmatpush.bf16.msra.mxu0 %v981_v3  ;;  %997 = vmatpush.bf16.msra.mxu2 %v981_v3  ;;  %v1500_v50 = vld [vmem:[%s1387_s16 + $0xe0] sm:$0xff]  ;;  %v1503_v51 = vld [vmem:[%s1387_s16 + $0xe8] sm:$0xff]  ;;  %v988_v52 = vld [vmem:[#allocation7 + $0x18] sm:$0xff]  ;;  %v318_v53 = vpack.c.bf16 %v1497_v49, %v1494_v48 }
  0x3f   : > { %602 = vmatpush.bf16.msra.mxu1 %v991_v45  ;;  %1003 = vmatpush.bf16.msra.mxu3 %v991_v45  ;;  %v326_v54 = vpack.c.bf16 %v1503_v51, %v1500_v50  ;;  %v987_v55 = vld [vmem:[#allocation7 + $0x10] sm:$0xff]  ;;  %v986_v56 = vld [vmem:[#allocation7 + $0x8] sm:$0xff]  ;;  %v985_v57 = vld [vmem:[#allocation7] sm:$0xff] }
  0x40   : > { %v1510_v58 = vld [vmem:[%s1387_s16 + $0x70] sm:$0xff]  ;;  %v1513_v59 = vld [vmem:[%s1387_s16 + $0x78] sm:$0xff]  ;;  %v1528_v1 = vld [vmem:[%s1703_s2] ss:$0 sm:$0xff] }
  0x41   : > { %v1516_v60 = vld [vmem:[%s1387_s16 + $0xf0] sm:$0xff]  ;;  %v1519_v61 = vld [vmem:[%s1387_s16 + $0xf8] sm:$0xff]  ;;  %v319_v62 = vpack.c.bf16 %v1513_v59, %v1510_v58 }
  0x42   : > { %400 = vmatpush.bf16.msra.mxu0 %v980_v4  ;;  %998 = vmatpush.bf16.msra.mxu2 %v980_v4  ;;  %v327_v63 = vpack.c.bf16 %v1519_v61, %v1516_v60 }
  0x43   : > { %603 = vmatpush.bf16.msra.mxu1 %v990_v46  ;;  %1004 = vmatpush.bf16.msra.mxu3 %v990_v46 }
  0x46   : > { %401 = vmatpush.bf16.msra.mxu0 %v979_v5  ;;  %999 = vmatpush.bf16.msra.mxu2 %v979_v5 }
  0x47   : > { %604 = vmatpush.bf16.msra.mxu1 %v989_v47  ;;  %1005 = vmatpush.bf16.msra.mxu3 %v989_v47 }
  0x4a   : > { %402 = vmatpush.bf16.msra.mxu0 %v978_v6  ;;  %1000 = vmatpush.bf16.msra.mxu2 %v978_v6 }
  0x4b   : > { %605 = vmatpush.bf16.msra.mxu1 %v988_v52  ;;  %1006 = vmatpush.bf16.msra.mxu3 %v988_v52 }
  0x4e   : > { %403 = vmatpush.bf16.msra.mxu0 %v977_v7  ;;  %1001 = vmatpush.bf16.msra.mxu2 %v977_v7 }
  0x4f   : > { %606 = vmatpush.bf16.msra.mxu1 %v987_v55  ;;  %1007 = vmatpush.bf16.msra.mxu3 %v987_v55 }
  0x51   : > { %404 = vmatmul.bf16.vlgmr.msra.gmra.mxu0 %v312_v12  ;;  %444 = vmatmul.bf16.vlgmr.msra.gmra.mxu2 %v320_v13 }
  0x53   : > { %607 = vmatpush.bf16.msra.mxu1 %v986_v56  ;;  %1008 = vmatpush.bf16.msra.mxu3 %v986_v56 }
  0x57   : > { %608 = vmatpush.bf16.msra.mxu1 %v985_v57  ;;  %1009 = vmatpush.bf16.msra.mxu3 %v985_v57 }
  0x61   : > { %409 = vmatmul.bf16.gmra.mxu0 %v313_v18  ;;  %449 = vmatmul.bf16.gmra.mxu2 %v321_v19 }
  0x71   : > { %414 = vmatmul.bf16.gmra.mxu0 %v314_v24  ;;  %454 = vmatmul.bf16.gmra.mxu2 %v322_v25 }
  0x81   : > { %419 = vmatmul.bf16.gmra.mxu0 %v315_v30  ;;  %459 = vmatmul.bf16.gmra.mxu2 %v323_v31 }
  0x91   : > { %424 = vmatmul.bf16.gmra.mxu0 %v316_v36  ;;  %464 = vmatmul.bf16.gmra.mxu2 %v324_v37 }
  0xa1   : > { %429 = vmatmul.bf16.gmra.mxu0 %v317_v43  ;;  %469 = vmatmul.bf16.gmra.mxu2 %v325_v44 }
  0xb1   : > { %434 = vmatmul.bf16.gmra.mxu0 %v318_v53  ;;  %474 = vmatmul.bf16.gmra.mxu2 %v326_v54 }
  0xc1   : > { %439 = vmatmul.bf16.gmra.mxu0 %v319_v62  ;;  %479 = vmatmul.bf16.gmra.mxu2 %v327_v63 }
  0xce   : > { %v405_v0 = vpop.f32.mrf.mxu0 }
  0xcf   : > { %v406_v2 = vadd.f32 %v1528_v1, %v405_v0 }
  0xd1   : > { %v485_v5 = vmax.f32 %v406_v2, 0.0 }
  0xd4   : > { %v445_v3 = vpop.f32.mrf.mxu2 }
  0xd5   : > { %v446_v12 = vadd.f32 %v1528_v1, %v445_v3 }
  0xd6   : > { %v407_v4 = vpop.f32.mrf.mxu0 }
  0xd7   : > { %v408_v6 = vadd.f32 %v1528_v1, %v407_v4  ;;  %v501_v25 = vmax.f32 %v446_v12, 0.0 }
  0xd9   : > { %v486_v7 = vmax.f32 %v408_v6, 0.0 }
  0xdb   : > { %v517_v13 = vpack.c.bf16 %v486_v7, %v485_v5 }
  0xdc   : > { %v447_v18 = vpop.f32.mrf.mxu2 }
  0xdd   : > { %v448_v19 = vadd.f32 %v1528_v1, %v447_v18  ;;  %609 = vmatmul.bf16.vlgmr.msra.gmra.mxu1 %v517_v13 }
  0xde   : > { %v410_v24 = vpop.f32.mrf.mxu0 }
  0xdf   : > { %v502_v30 = vmax.f32 %v448_v19, 0.0  ;;  %v411_v36 = vadd.f32 %v1528_v1, %v410_v24 }
  0xe1   : > { %v525_v31 = vpack.c.bf16 %v502_v30, %v501_v25  ;;  %v487_v43 = vmax.f32 %v411_v36, 0.0 }
  0xe3   : > { %649 = vmatmul.bf16.vlgmr.msra.gmra.mxu3 %v525_v31 }
  0xe4   : > { %v450_v37 = vpop.f32.mrf.mxu2 }
  0xe5   : > { %v451_v46 = vadd.f32 %v1528_v1, %v450_v37 }
  0xe6   : > { %v412_v38 = vpop.f32.mrf.mxu0 }
  0xe7   : > { %v413_v44 = vadd.f32 %v1528_v1, %v412_v38  ;;  %v503_v55 = vmax.f32 %v451_v46, 0.0 }
  0xe9   : > { %v488_v45 = vmax.f32 %v413_v44, 0.0 }
  0xeb   : > { %v518_v47 = vpack.c.bf16 %v488_v45, %v487_v43 }
  0xec   : > { %v452_v52 = vpop.f32.mrf.mxu2 }
  0xed   : > { %v453_v53 = vadd.f32 %v1528_v1, %v452_v52  ;;  %614 = vmatmul.bf16.gmra.mxu1 %v518_v47 }
  0xee   : > { %v415_v54 = vpop.f32.mrf.mxu0 }
  0xef   : > { %v504_v56 = vmax.f32 %v453_v53, 0.0  ;;  %v416_v62 = vadd.f32 %v1528_v1, %v415_v54 }
  0xf1   : > { %v526_v57 = vpack.c.bf16 %v504_v56, %v503_v55  ;;  %v489_v2 = vmax.f32 %v416_v62, 0.0 }
  0xf3   : > { %654 = vmatmul.bf16.gmra.mxu3 %v526_v57 }
  0xf4   : > { %v455_v63 = vpop.f32.mrf.mxu2 }
  0xf5   : > { %v456_v5 = vadd.f32 %v1528_v1, %v455_v63 }
  0xf6   : > { %v417_v0 = vpop.f32.mrf.mxu0 }
  0xf7   : > { %v418_v3 = vadd.f32 %v1528_v1, %v417_v0  ;;  %v505_v18 = vmax.f32 %v456_v5, 0.0 }
  0xf9   : > { %v490_v4 = vmax.f32 %v418_v3, 0.0 }
  0xfb   : > { %v519_v6 = vpack.c.bf16 %v490_v4, %v489_v2 }
  0xfc   : > { %v457_v7 = vpop.f32.mrf.mxu2 }
  0xfd   : > { %v458_v12 = vadd.f32 %v1528_v1, %v457_v7  ;;  %619 = vmatmul.bf16.gmra.mxu1 %v519_v6 }
  0xfe   : > { %v420_v13 = vpop.f32.mrf.mxu0 }
  0xff   : > { %v506_v19 = vmax.f32 %v458_v12, 0.0  ;;  %v421_v25 = vadd.f32 %v1528_v1, %v420_v13 }
 0x101   : > { %v527_v24 = vpack.c.bf16 %v506_v19, %v505_v18  ;;  %v491_v36 = vmax.f32 %v421_v25, 0.0 }
 0x103   : > { %659 = vmatmul.bf16.gmra.mxu3 %v527_v24 }
 0x104   : > { %v460_v30 = vpop.f32.mrf.mxu2 }
 0x105   : > { %v461_v43 = vadd.f32 %v1528_v1, %v460_v30 }
 0x106   : > { %v422_v31 = vpop.f32.mrf.mxu0 }
 0x107   : > { %v423_v37 = vadd.f32 %v1528_v1, %v422_v31  ;;  %v507_v52 = vmax.f32 %v461_v43, 0.0 }
 0x109   : > { %v492_v38 = vmax.f32 %v423_v37, 0.0 }
 0x10b   : > { %v520_v44 = vpack.c.bf16 %v492_v38, %v491_v36 }
 0x10c   : > { %v462_v45 = vpop.f32.mrf.mxu2 }
 0x10d   : > { %v463_v46 = vadd.f32 %v1528_v1, %v462_v45  ;;  %624 = vmatmul.bf16.gmra.mxu1 %v520_v44 }
 0x10e   : > { %v425_v47 = vpop.f32.mrf.mxu0 }
 0x10f   : > { %v508_v53 = vmax.f32 %v463_v46, 0.0  ;;  %v426_v55 = vadd.f32 %v1528_v1, %v425_v47 }
 0x111   : > { %v528_v54 = vpack.c.bf16 %v508_v53, %v507_v52  ;;  %v493_v62 = vmax.f32 %v426_v55, 0.0 }
 0x113   : > { %664 = vmatmul.bf16.gmra.mxu3 %v528_v54 }
 0x114   : > { %v465_v56 = vpop.f32.mrf.mxu2 }
 0x115   : > { %v466_v2 = vadd.f32 %v1528_v1, %v465_v56 }
 0x116   : > { %v427_v57 = vpop.f32.mrf.mxu0 }
 0x117   : > { %v428_v63 = vadd.f32 %v1528_v1, %v427_v57  ;;  %v509_v7 = vmax.f32 %v466_v2, 0.0 }
 0x119   : > { %v494_v0 = vmax.f32 %v428_v63, 0.0 }
 0x11b   : > { %v521_v3 = vpack.c.bf16 %v494_v0, %v493_v62 }
 0x11c   : > { %v467_v4 = vpop.f32.mrf.mxu2 }
 0x11d   : > { %v468_v5 = vadd.f32 %v1528_v1, %v467_v4  ;;  %629 = vmatmul.bf16.gmra.mxu1 %v521_v3 }
 0x11e   : > { %v430_v6 = vpop.f32.mrf.mxu0 }
 0x11f   : > { %v510_v12 = vmax.f32 %v468_v5, 0.0  ;;  %v431_v18 = vadd.f32 %v1528_v1, %v430_v6 }
 0x121   : > { %v529_v13 = vpack.c.bf16 %v510_v12, %v509_v7  ;;  %v495_v25 = vmax.f32 %v431_v18, 0.0 }
 0x123   : > { %669 = vmatmul.bf16.gmra.mxu3 %v529_v13 }
 0x124   : > { %v470_v19 = vpop.f32.mrf.mxu2 }
 0x125   : > { %v471_v36 = vadd.f32 %v1528_v1, %v470_v19 }
 0x126   : > { %v432_v24 = vpop.f32.mrf.mxu0 }
 0x127   : > { %v433_v30 = vadd.f32 %v1528_v1, %v432_v24  ;;  %v511_v45 = vmax.f32 %v471_v36, 0.0 }
 0x129   : > { %v496_v31 = vmax.f32 %v433_v30, 0.0 }
 0x12b   : > { %v522_v37 = vpack.c.bf16 %v496_v31, %v495_v25 }
 0x12c   : > { %v472_v38 = vpop.f32.mrf.mxu2 }
 0x12d   : > { %v473_v43 = vadd.f32 %v1528_v1, %v472_v38  ;;  %634 = vmatmul.bf16.gmra.mxu1 %v522_v37 }
 0x12e   : > { %v435_v44 = vpop.f32.mrf.mxu0 }
 0x12f   : > { %v512_v46 = vmax.f32 %v473_v43, 0.0  ;;  %v436_v52 = vadd.f32 %v1528_v1, %v435_v44  ;;  %v1565_v44 = vld [vmem:[%s1705_s4] ss:$0 sm:$0xff] }
 0x131   : > { %v530_v47 = vpack.c.bf16 %v512_v46, %v511_v45  ;;  %v497_v55 = vmax.f32 %v436_v52, 0.0 }
 0x133   : > { %674 = vmatmul.bf16.gmra.mxu3 %v530_v47 }
 0x134   : > { %v475_v53 = vpop.f32.mrf.mxu2 }
 0x135   : > { %v476_v62 = vadd.f32 %v1528_v1, %v475_v53 }
 0x136   : > { %v437_v54 = vpop.f32.mrf.mxu0 }
 0x137   : > { %v438_v56 = vadd.f32 %v1528_v1, %v437_v54  ;;  %v513_v4 = vmax.f32 %v476_v62, 0.0 }
 0x139   : > { %v498_v57 = vmax.f32 %v438_v56, 0.0 }
 0x13b   : > { %v523_v63 = vpack.c.bf16 %v498_v57, %v497_v55 }
 0x13c   : > { %v477_v0 = vpop.f32.mrf.mxu2 }
 0x13d   : > { %v478_v2 = vadd.f32 %v1528_v1, %v477_v0  ;;  %639 = vmatmul.bf16.gmra.mxu1 %v523_v63 }
 0x13e   : > { %v440_v3 = vpop.f32.mrf.mxu0 }
 0x13f   : > { %v514_v5 = vmax.f32 %v478_v2, 0.0  ;;  %v441_v7 = vadd.f32 %v1528_v1, %v440_v3 }
 0x141   : > { %v531_v6 = vpack.c.bf16 %v514_v5, %v513_v4  ;;  %v499_v18 = vmax.f32 %v441_v7, 0.0 }
 0x143   : > { %679 = vmatmul.bf16.gmra.mxu3 %v531_v6 }
 0x144   : > { %v480_v12 = vpop.f32.mrf.mxu2 }
 0x145   : > { %v481_v25 = vadd.f32 %v1528_v1, %v480_v12 }
 0x146   : > { %v442_v13 = vpop.f32.mrf.mxu0 }
 0x147   : > { %v443_v19 = vadd.f32 %v1528_v1, %v442_v13  ;;  %v515_v37 = vmax.f32 %v481_v25, 0.0 }
 0x149   : > { %v500_v24 = vmax.f32 %v443_v19, 0.0 }
 0x14b   : > { %v524_v30 = vpack.c.bf16 %v500_v24, %v499_v18 }
 0x14c   : > { %v482_v31 = vpop.f32.mrf.mxu2 }
 0x14d   : > { %v483_v36 = vadd.f32 %v1528_v1, %v482_v31  ;;  %644 = vmatmul.bf16.gmra.mxu1 %v524_v30 }
 0x14f   : > { %v516_v38 = vmax.f32 %v483_v36, 0.0 }
 0x151   : > { %v532_v43 = vpack.c.bf16 %v516_v38, %v515_v37 }
 0x153   : > { %684 = vmatmul.bf16.gmra.mxu3 %v532_v43 }
 0x15a   : > { %v610_v45 = vpop.f32.mrf.mxu1 }
 0x15b   : > { %v611_v46 = vadd.f32 %v1565_v44, %v610_v45 }
 0x15d   : > { %v690_v47 = vadd.f32 %v611_v46, %v1398_v8 }
 0x15f   : > { %v722_v52 = vmax.f32 %v690_v47, 0.0 }
 0x161   : > { %754 = vst [vmem:[%s1571_s11] sm:$0xff] %v722_v52 }
 0x162   : > { %v612_v1 = vpop.f32.mrf.mxu1 }
 0x163   : > { %v613_v53 = vadd.f32 %v1565_v44, %v612_v1 }
 0x165   : > { %v691_v54 = vadd.f32 %v613_v53, %v1401_v9 }
 0x166   : > { %v650_v55 = vpop.f32.mrf.mxu3 }
 0x167   : > { %v723_v56 = vmax.f32 %v691_v54, 0.0  ;;  %v651_v57 = vadd.f32 %v1565_v44, %v650_v55 }
 0x169   : > { %755 = vst [vmem:[%s1571_s11 + $0x8] sm:$0xff] %v723_v56  ;;  %v706_v8 = vadd.f32 %v651_v57, %v1404_v10 }
 0x16a   : > { %v615_v62 = vpop.f32.mrf.mxu1 }
 0x16b   : > { %v738_v63 = vmax.f32 %v706_v8, 0.0  ;;  %v616_v0 = vadd.f32 %v1565_v44, %v615_v62 }
 0x16d   : > { %770 = vst [vmem:[%s1571_s11 + $0x80] sm:$0xff] %v738_v63  ;;  %v692_v2 = vadd.f32 %v616_v0, %v1414_v14 }
 0x16e   : > { %v652_v3 = vpop.f32.mrf.mxu3 }
 0x16f   : > { %v724_v4 = vmax.f32 %v692_v2, 0.0  ;;  %v653_v9 = vadd.f32 %v1565_v44, %v652_v3 }
 0x171   : > { %756 = vst [vmem:[%s1571_s11 + $0x10] sm:$0xff] %v724_v4  ;;  %v707_v5 = vadd.f32 %v653_v9, %v1407_v11 }
 0x172   : > { %v617_v6 = vpop.f32.mrf.mxu1 }
 0x173   : > { %v739_v7 = vmax.f32 %v707_v5, 0.0  ;;  %v618_v10 = vadd.f32 %v1565_v44, %v617_v6 }
 0x175   : > { %771 = vst [vmem:[%s1571_s11 + $0x88] sm:$0xff] %v739_v7  ;;  %v693_v12 = vadd.f32 %v618_v10, %v1417_v15 }
 0x176   : > { %v655_v13 = vpop.f32.mrf.mxu3 }
 0x177   : > { %v725_v18 = vmax.f32 %v693_v12, 0.0  ;;  %v656_v14 = vadd.f32 %v1565_v44, %v655_v13 }
 0x179   : > { %757 = vst [vmem:[%s1571_s11 + $0x18] sm:$0xff] %v725_v18  ;;  %v708_v19 = vadd.f32 %v656_v14, %v1420_v16 }
 0x17a   : > { %v620_v24 = vpop.f32.mrf.mxu1 }
 0x17b   : > { %v740_v25 = vmax.f32 %v708_v19, 0.0  ;;  %v621_v11 = vadd.f32 %v1565_v44, %v620_v24 }
 0x17d   : > { %772 = vst [vmem:[%s1571_s11 + $0x90] sm:$0xff] %v740_v25  ;;  %v694_v30 = vadd.f32 %v621_v11, %v1430_v20 }
 0x17e   : > { %v657_v31 = vpop.f32.mrf.mxu3 }
 0x17f   : > { %v726_v36 = vmax.f32 %v694_v30, 0.0  ;;  %v658_v15 = vadd.f32 %v1565_v44, %v657_v31 }
 0x181   : > { %758 = vst [vmem:[%s1571_s11 + $0x20] sm:$0xff] %v726_v36  ;;  %v709_v37 = vadd.f32 %v658_v15, %v1423_v17 }
 0x182   : > { %v622_v38 = vpop.f32.mrf.mxu1 }
 0x183   : > { %v741_v43 = vmax.f32 %v709_v37, 0.0  ;;  %v623_v16 = vadd.f32 %v1565_v44, %v622_v38 }
 0x185   : > { %773 = vst [vmem:[%s1571_s11 + $0x98] sm:$0xff] %v741_v43  ;;  %v695_v45 = vadd.f32 %v623_v16, %v1433_v21 }
 0x186   : > { %v660_v46 = vpop.f32.mrf.mxu3 }
 0x187   : > { %v727_v47 = vmax.f32 %v695_v45, 0.0  ;;  %v661_v20 = vadd.f32 %v1565_v44, %v660_v46 }
 0x189   : > { %759 = vst [vmem:[%s1571_s11 + $0x28] sm:$0xff] %v727_v47  ;;  %v710_v52 = vadd.f32 %v661_v20, %v1436_v22 }
 0x18a   : > { %v625_v1 = vpop.f32.mrf.mxu1 }
 0x18b   : > { %v742_v53 = vmax.f32 %v710_v52, 0.0  ;;  %v626_v17 = vadd.f32 %v1565_v44, %v625_v1 }
 0x18d   : > { %774 = vst [vmem:[%s1571_s11 + $0xa0] sm:$0xff] %v742_v53  ;;  %v696_v54 = vadd.f32 %v626_v17, %v1446_v26 }
 0x18e   : > { %v662_v55 = vpop.f32.mrf.mxu3 }
 0x18f   : > { %v728_v56 = vmax.f32 %v696_v54, 0.0  ;;  %v663_v21 = vadd.f32 %v1565_v44, %v662_v55 }
 0x191   : > { %760 = vst [vmem:[%s1571_s11 + $0x30] sm:$0xff] %v728_v56  ;;  %v711_v57 = vadd.f32 %v663_v21, %v1439_v23 }
 0x192   : > { %v627_v8 = vpop.f32.mrf.mxu1 }
 0x193   : > { %v743_v62 = vmax.f32 %v711_v57, 0.0  ;;  %v628_v22 = vadd.f32 %v1565_v44, %v627_v8 }
 0x195   : > { %775 = vst [vmem:[%s1571_s11 + $0xa8] sm:$0xff] %v743_v62  ;;  %v697_v63 = vadd.f32 %v628_v22, %v1449_v27 }
 0x196   : > { %v665_v0 = vpop.f32.mrf.mxu3 }
 0x197   : > { %v729_v2 = vmax.f32 %v697_v63, 0.0  ;;  %v666_v26 = vadd.f32 %v1565_v44, %v665_v0 }
 0x199   : > { %761 = vst [vmem:[%s1571_s11 + $0x38] sm:$0xff] %v729_v2  ;;  %v712_v3 = vadd.f32 %v666_v26, %v1452_v28 }
 0x19a   : > { %v630_v4 = vpop.f32.mrf.mxu1 }
 0x19b   : > { %v744_v9 = vmax.f32 %v712_v3, 0.0  ;;  %v631_v23 = vadd.f32 %v1565_v44, %v630_v4 }
 0x19d   : > { %776 = vst [vmem:[%s1571_s11 + $0xb0] sm:$0xff] %v744_v9  ;;  %v698_v5 = vadd.f32 %v631_v23, %v1462_v32 }
 0x19e   : > { %v667_v6 = vpop.f32.mrf.mxu3 }
 0x19f   : > { %v730_v7 = vmax.f32 %v698_v5, 0.0  ;;  %v668_v27 = vadd.f32 %v1565_v44, %v667_v6 }
 0x1a1   : > { %762 = vst [vmem:[%s1571_s11 + $0x40] sm:$0xff] %v730_v7  ;;  %v713_v10 = vadd.f32 %v668_v27, %v1455_v29 }
 0x1a2   : > { %v632_v12 = vpop.f32.mrf.mxu1 }
 0x1a3   : > { %v745_v13 = vmax.f32 %v713_v10, 0.0  ;;  %v633_v28 = vadd.f32 %v1565_v44, %v632_v12 }
 0x1a5   : > { %777 = vst [vmem:[%s1571_s11 + $0xb8] sm:$0xff] %v745_v13  ;;  %v699_v18 = vadd.f32 %v633_v28, %v1465_v33 }
 0x1a6   : > { %v670_v14 = vpop.f32.mrf.mxu3 }
 0x1a7   : > { %v731_v19 = vmax.f32 %v699_v18, 0.0  ;;  %v671_v32 = vadd.f32 %v1565_v44, %v670_v14 }
 0x1a9   : > { %763 = vst [vmem:[%s1571_s11 + $0x48] sm:$0xff] %v731_v19  ;;  %v714_v24 = vadd.f32 %v671_v32, %v1468_v34 }
 0x1aa   : > { %v635_v25 = vpop.f32.mrf.mxu1 }
 0x1ab   : > { %v746_v11 = vmax.f32 %v714_v24, 0.0  ;;  %v636_v29 = vadd.f32 %v1565_v44, %v635_v25 }
 0x1ad   : > { %778 = vst [vmem:[%s1571_s11 + $0xc0] sm:$0xff] %v746_v11  ;;  %v700_v30 = vadd.f32 %v636_v29, %v1478_v39 }
 0x1ae   : > { %v672_v31 = vpop.f32.mrf.mxu3 }
 0x1af   : > { %v732_v36 = vmax.f32 %v700_v30, 0.0  ;;  %v673_v33 = vadd.f32 %v1565_v44, %v672_v31 }
 0x1b1   : > { %764 = vst [vmem:[%s1571_s11 + $0x50] sm:$0xff] %v732_v36  ;;  %v715_v15 = vadd.f32 %v673_v33, %v1471_v35 }
 0x1b2   : > { %v637_v37 = vpop.f32.mrf.mxu1 }
 0x1b3   : > { %v747_v38 = vmax.f32 %v715_v15, 0.0  ;;  %v638_v34 = vadd.f32 %v1565_v44, %v637_v37 }
 0x1b5   : > { %779 = vst [vmem:[%s1571_s11 + $0xc8] sm:$0xff] %v747_v38  ;;  %v701_v43 = vadd.f32 %v638_v34, %v1481_v40 }
 0x1b6   : > { %v675_v16 = vpop.f32.mrf.mxu3 }
 0x1b7   : > { %v733_v45 = vmax.f32 %v701_v43, 0.0  ;;  %v676_v39 = vadd.f32 %v1565_v44, %v675_v16 }
 0x1b9   : > { %765 = vst [vmem:[%s1571_s11 + $0x58] sm:$0xff] %v733_v45  ;;  %v716_v46 = vadd.f32 %v676_v39, %v1484_v41 }
 0x1ba   : > { %v640_v47 = vpop.f32.mrf.mxu1 }
 0x1bb   : > { %v748_v20 = vmax.f32 %v716_v46, 0.0  ;;  %v641_v35 = vadd.f32 %v1565_v44, %v640_v47 }
 0x1bd   : > { %780 = vst [vmem:[%s1571_s11 + $0xd0] sm:$0xff] %v748_v20  ;;  %v702_v52 = vadd.f32 %v641_v35, %v1494_v48 }
 0x1be   : > { %v677_v1 = vpop.f32.mrf.mxu3 }
 0x1bf   : > { %v734_v53 = vmax.f32 %v702_v52, 0.0  ;;  %v678_v40 = vadd.f32 %v1565_v44, %v677_v1 }
 0x1c1   : > { %766 = vst [vmem:[%s1571_s11 + $0x60] sm:$0xff] %v734_v53  ;;  %v717_v17 = vadd.f32 %v678_v40, %v1487_v42 }
 0x1c2   : > { %v642_v54 = vpop.f32.mrf.mxu1 }
 0x1c3   : > { %v749_v55 = vmax.f32 %v717_v17, 0.0  ;;  %v643_v41 = vadd.f32 %v1565_v44, %v642_v54 }
 0x1c5   : > { %781 = vst [vmem:[%s1571_s11 + $0xd8] sm:$0xff] %v749_v55  ;;  %v703_v56 = vadd.f32 %v643_v41, %v1497_v49 }
 0x1c6   : > { %v680_v21 = vpop.f32.mrf.mxu3 }
 0x1c7   : > { %v735_v57 = vmax.f32 %v703_v56, 0.0  ;;  %v681_v48 = vadd.f32 %v1565_v44, %v680_v21 }
 0x1c9   : > { %767 = vst [vmem:[%s1571_s11 + $0x68] sm:$0xff] %v735_v57  ;;  %v718_v8 = vadd.f32 %v681_v48, %v1500_v50 }
 0x1ca   : > { %v645_v62 = vpop.f32.mrf.mxu1 }
 0x1cb   : > { %v750_v22 = vmax.f32 %v718_v8, 0.0  ;;  %v646_v42 = vadd.f32 %v1565_v44, %v645_v62 }
 0x1cd   : > { %782 = vst [vmem:[%s1571_s11 + $0xe0] sm:$0xff] %v750_v22  ;;  %v704_v63 = vadd.f32 %v646_v42, %v1510_v58 }
 0x1ce   : > { %v682_v0 = vpop.f32.mrf.mxu3 }
 0x1cf   : > { %v736_v2 = vmax.f32 %v704_v63, 0.0  ;;  %v683_v49 = vadd.f32 %v1565_v44, %v682_v0 }
 0x1d1   : > { %768 = vst [vmem:[%s1571_s11 + $0x70] sm:$0xff] %v736_v2  ;;  %v719_v26 = vadd.f32 %v683_v49, %v1503_v51 }
 0x1d2   : > { %v647_v3 = vpop.f32.mrf.mxu1 }
 0x1d3   : > { %v751_v50 = vmax.f32 %v719_v26, 0.0  ;;  %v648_v4 = vadd.f32 %v1565_v44, %v647_v3 }
 0x1d5   : > { %783 = vst [vmem:[%s1571_s11 + $0xe8] sm:$0xff] %v751_v50  ;;  %v705_v9 = vadd.f32 %v648_v4, %v1513_v59 }
 0x1d6   : > { %v685_v23 = vpop.f32.mrf.mxu3 }
 0x1d7   : > { %v737_v5 = vmax.f32 %v705_v9, 0.0  ;;  %v686_v58 = vadd.f32 %v1565_v44, %v685_v23 }
 0x1d9   : > { %769 = vst [vmem:[%s1571_s11 + $0x78] sm:$0xff] %v737_v5  ;;  %v720_v6 = vadd.f32 %v686_v58, %v1516_v60 }
 0x1db   : > { %v752_v7 = vmax.f32 %v720_v6, 0.0 }
 0x1dd   : > { %784 = vst [vmem:[%s1571_s11 + $0xf0] sm:$0xff] %v752_v7 }
 0x1de   : > { %v687_v51 = vpop.f32.mrf.mxu3 }
 0x1df   : > { %v688_v59 = vadd.f32 %v1565_v44, %v687_v51 }
 0x1e1   : > { %v721_v27 = vadd.f32 %v688_v59, %v1519_v61 }
 0x1e3   : > { %v753_v10 = vmax.f32 %v721_v27, 0.0 }
 0x1e5   : > { %785 = vst [vmem:[%s1571_s11 + $0xf8] sm:$0xff] %v753_v10 }
 0x1e6   : > { %1202 = shalt.err (!%p1199_p10)
}
 0x1e7   : > { %s1253_s8 = smov 128   ;;  %s1254_s10 = smov 8  }
 0x1e8   : > { %1020 = dma.vmem_to_hbm [thread:$0]  (%p1351_p3), %s800_s6, 4096, %s802_s26, %s787_s7, %s1253_s8, %s1253_s8, %s1254_s10  }
 0x1e9 PF: > { %s816_s11 = sand.u32 1, %s1233_s18   ;;  %p1712_p12 = scmp.ge.s32.totalorder %s1245_s21, 2 }
 0x1ea   : > { %s817_s12 = scalar_lea.sflag [#allocation4], %s816_s11 }
 0x1eb   : > { %p1034_p13 = pnand %p1712_p12, %p1320_p6 }
 0x1ed   : > { %p1035_p0 = pneg %p1034_p13 }
 0x1ef   : > { %1228 = dma.done.wait (%p1035_p0), %s817_s12, 4096  }
 0x1f0   : > { %1230 = vsyncadd (%p1035_p0), %s817_s12, 4294963200  ;;  %p19_p5 = scmp.ge.s32.totalorder %s1341_s14, 4   ;;  %s1713_s18 = smov %s1237_s19 }
 0x1f1   : > { %s1714_s19 = smov %s1241_s20  ;;  %s1715_s20 = smov %s1357_s23 }
 0x1f2   : > { %s1716_s21 = smov %s1341_s14  ;;  %21 = sbr.rel (!%p19_p5) target bundleno = 6 (0x6), region = 93 }
 0x1f7   :  { %823 = vsyncpa [#allocation3], 1 }
 0x1f8   :  { %825 = vsyncpa [#allocation3 + $0x1], 1 }
 0x1f9   :  { %826 = vsyncpa [#allocation6], 1 }
 0x1fa   :  { %827 = vsyncpa [#allocation4], 1 }
 0x1fb   :  { %829 = vsyncpa [#allocation4 + $0x1], 1 }

</bundles_post_ra>
